<compile_context>
chip_gen: v7x
topology: tpu7x:2x2x1
jax: 0.10.0
libtpu: 0.0.40
codegen_flags: <defaults>
</compile_context>

<pallas_src>
import functools

import jax
import jax.numpy as jnp
from jax.experimental import pallas as pl
from jax.experimental.pallas import tpu as pltpu


def _round_up(x, mult):
    return ((x + mult - 1) // mult) * mult


def _block_diag(blocks):
    """Trace-time block-diagonal builder (runs once at parameter-fuse time)."""
    rows = sum(b.shape[0] for b in blocks)
    cols = sum(b.shape[1] for b in blocks)
    out = jnp.zeros((rows, cols), blocks[0].dtype)
    ro = co = 0
    for b in blocks:
        out = out.at[ro:ro + b.shape[0], co:co + b.shape[1]].set(b)
        ro += b.shape[0]
        co += b.shape[1]
    return out


# ----------------------------- Pallas kernel --------------------------------

def _fused_mlp_kernel(x_ref, w1_ref, b1_ref, w2_ref, b2_ref, w3_ref, b3_ref,
                      o_ref):
    """One row tile of the fused (all-agents) 3-layer MLP.

    Matmuls accumulate in f32 on the MXU; bias-add / ReLU stay in f32 on the
    VPU (correct on v5e which has no bf16 VALU), then cast back to the compute
    dtype for the next MXU pass.
    """
    x = x_ref[...]                                                # (rt, F_in)
    h1 = jnp.dot(x, w1_ref[...], preferred_element_type=jnp.float32) + b1_ref[...]
    h1 = jnp.maximum(h1, 0.0).astype(w2_ref.dtype)
    h2 = jnp.dot(h1, w2_ref[...], preferred_element_type=jnp.float32) + b2_ref[...]
    h2 = jnp.maximum(h2, 0.0).astype(w3_ref.dtype)
    q = jnp.dot(h2, w3_ref[...], preferred_element_type=jnp.float32) + b3_ref[...]
    o_ref[...] = q.astype(o_ref.dtype)                            # (rt, out_pad)


def fused_mlp(x, w1, b1, w2, b2, w3, b3, *, row_tile, out_dtype,
              single_buffer_weights):
    """x: (rows_p, F_in). Weights already fused/block-diagonal/padded.
    Returns (rows_p, out_pad) in `out_dtype`, out_pad a multiple of 128."""
    rows_p, f_in = x.shape
    nh_p = w1.shape[1]
    out_pad = w3.shape[1]
    n_tiles = rows_p // row_tile

    # Single-buffer the resident (constant-index) weights when requested: they
    # never change across grid steps, so the default double-buffering only
    # costs VMEM (matters once n*H reaches ~1-2K, especially on v7x's 64 MiB).
    w_mode = None
    if single_buffer_weights and hasattr(pl, "Buffered"):
        w_mode = pl.Buffered(1)

    def resident(arr):
        idx = lambda r: (0, 0)   # constant block index -> stays resident in VMEM
        if w_mode is not None:
            try:
                return pl.BlockSpec(arr.shape, idx, pipeline_mode=w_mode)
            except TypeError:     # older pl.BlockSpec without pipeline_mode
                pass
        return pl.BlockSpec(arr.shape, idx)

    # --- VMEM budget, computed (not hard-coded). v7x has 64 MiB per TC. ---
    in_bytes = x.dtype.itemsize
    out_bytes = jnp.dtype(out_dtype).itemsize
    wbuf = 1 if w_mode is not None else 2
    weight_bytes = (w1.size + w2.size + w3.size) * w1.dtype.itemsize * wbuf
    bias_bytes = (b1.size + b2.size + b3.size) * 4 * wbuf
    stream_bytes = 2 * row_tile * f_in * in_bytes + 2 * row_tile * out_pad * out_bytes
    vmem_limit = int(1.5 * (weight_bytes + bias_bytes + stream_bytes)) + (4 << 20)
    vmem_limit = min(max(vmem_limit, 16 << 20), 64 << 20)

    # --- advisory cost estimate so XLA schedules the wrapper ops sensibly ---
    flops = 2 * rows_p * (f_in * nh_p + nh_p * nh_p + nh_p * out_pad)
    bytes_accessed = (rows_p * f_in * in_bytes
                      + rows_p * out_pad * out_bytes
                      + (w1.size + w2.size + w3.size) * w1.dtype.itemsize
                      + (b1.size + b2.size + b3.size) * 4)

    return pl.pallas_call(
        _fused_mlp_kernel,
        out_shape=jax.ShapeDtypeStruct((rows_p, out_pad), out_dtype),
        grid_spec=pltpu.PrefetchScalarGridSpec(
            num_scalar_prefetch=0,
            grid=(n_tiles,),
            in_specs=[
                pl.BlockSpec((row_tile, f_in), lambda r: (r, 0)),   # x streams
                resident(w1), resident(b1),
                resident(w2), resident(b2),
                resident(w3), resident(b3),
            ],
            out_specs=pl.BlockSpec((row_tile, out_pad), lambda r: (r, 0)),
        ),
        compiler_params=pltpu.CompilerParams(
            dimension_semantics=("parallel",),     # row tiles independent -> megacore
            vmem_limit_bytes=vmem_limit),
        cost_estimate=pl.CostEstimate(flops=int(flops), transcendentals=0,
                                      bytes_accessed=int(bytes_accessed)),
    )(x, w1, b1, w2, b2, w3, b3)


# ----------------------- fused parameter construction ------------------------
# Hoisted out of the per-forward path: call ONCE per parameter update and pass
# the result into coma_critic_ns_forward.

def fuse_params(params, *, n_agents, n_actions, state_dim, obs_dim,
                obs_individual_obs=True, obs_last_action=True,
                compute_dtype=jnp.bfloat16):
    """Fold n independent per-agent MLPs into one block-structured MLP.

    Per-agent params (x @ W layout):
      w1: (n, input_shape, H), b1: (n, 1, H)
      w2: (n, H, H),           b2: (n, 1, H)
      w3: (n, H, m),           b3: (n, 1, m)

    Returns (W1f, b1f, W2f, b2f, W3f, b3f): W1f acts on the shared input
    [state | obs_0..obs_{n-1} | joint_actions | last_actions] with the COMA
    own-action mask folded into its joint block; hidden width NH = n*H is
    zero-padded to a multiple of 128 and the output to a multiple of 128
    (padded hidden columns stay exactly 0 through bias=0 + ReLU).
    """
    w1, b1, w2, b2, w3, b3 = params
    n, _, H = w1.shape
    m = n_actions
    NM = n * m
    NH = n * H
    NH_p = _round_up(NH, 128)
    out_pad = _round_up(NM, 128)
    S = state_dim
    O = obs_dim if obs_individual_obs else 0

    off_obs = S
    off_joint = S + O
    off_last = off_joint + NM

    blocks = []
    # state (shared feature): dense (S, NH)
    blocks.append(jnp.concatenate([w1[i, :S, :] for i in range(n)], axis=1))
    if obs_individual_obs:
        # per-agent obs: block-diagonal (n*O, NH)
        blocks.append(_block_diag([w1[i, off_obs:off_obs + O, :] for i in range(n)]))
    # joint actions (shared feature); own-action rows zeroed per agent column block
    w_joint = jnp.concatenate(
        [w1[i, off_joint:off_joint + NM, :] for i in range(n)], axis=1)    # (NM, NH)
    keep = 1.0 - jnp.eye(n, dtype=w_joint.dtype)       # keep[j, i] == 0 iff j == i
    keep = jnp.repeat(jnp.repeat(keep, m, axis=0), H, axis=1)              # (NM, NH)
    blocks.append(w_joint * keep)
    if obs_last_action:
        blocks.append(jnp.concatenate(
            [w1[i, off_last:off_last + NM, :] for i in range(n)], axis=1))

    w1f = jnp.concatenate(blocks, axis=0)                                  # (F_in, NH)
    # TODO(synk): once NH exceeds one MXU tile (128 on v5e, 256 on v6e/v7x),
    # switch layers 2-3 to a batched per-agent dot_general instead of one dense
    # NHxNH matmul (the block-diagonal form wastes ~n x MXU FLOPs on zeros).
    w2f = _block_diag([w2[i] for i in range(n)])                           # (NH, NH)
    w3f = _block_diag([w3[i] for i in range(n)])                           # (NH, NM)

    # Pad hidden NH -> NH_p (lane-dense activations) and output NM -> out_pad.
    w1f = jnp.pad(w1f, ((0, 0), (0, NH_p - NH)))
    w2f = jnp.pad(w2f, ((0, NH_p - NH), (0, NH_p - NH)))
    w3f = jnp.pad(w3f, ((0, NH_p - NH), (0, out_pad - NM)))

    b1f = jnp.pad(b1.reshape(1, NH), ((0, 0), (0, NH_p - NH))).astype(jnp.float32)
    b2f = jnp.pad(b2.reshape(1, NH), ((0, 0), (0, NH_p - NH))).astype(jnp.float32)
    b3f = jnp.pad(b3.reshape(1, NM), ((0, 0), (0, out_pad - NM))).astype(jnp.float32)

    cd = compute_dtype
    return (w1f.astype(cd), b1f, w2f.astype(cd), b2f, w3f.astype(cd), b3f)


def build_shared_inputs(state, obs, actions_onehot, *, obs_individual_obs,
                        obs_last_action):
    """Shared (non-duplicated) input slab (bs, T, F_in)."""
    bs, T = state.shape[0], state.shape[1]
    n, m = actions_onehot.shape[2], actions_onehot.shape[3]
    parts = [state]
    if obs_individual_obs:
        parts.append(obs.reshape(bs, T, -1))
    parts.append(actions_onehot.reshape(bs, T, n * m))
    if obs_last_action:
        last = jnp.concatenate(
            [jnp.zeros_like(actions_onehot[:, 0:1]), actions_onehot[:, :-1]], axis=1)
        parts.append(last.reshape(bs, T, n * m))
    return jnp.concatenate(parts, axis=-1)


# ------------------------------ full forward ---------------------------------

def coma_critic_ns_forward(state, obs, actions_onehot, fused_params, *,
                           n_agents, n_actions,
                           obs_individual_obs=True, obs_last_action=True,
                           compute_dtype=jnp.bfloat16, row_tile=512,
                           single_buffer_weights=None):
    """Full-sequence (t=None) forward. `fused_params` comes from fuse_params()."""
    w1f, b1f, w2f, b2f, w3f, b3f = fused_params
    bs, T = state.shape[0], state.shape[1]
    rows = bs * T
    NM = n_agents * n_actions

    x = build_shared_inputs(state, obs, actions_onehot,
                            obs_individual_obs=obs_individual_obs,
                            obs_last_action=obs_last_action)
    f_in = x.shape[-1]
    assert f_in == w1f.shape[0], (f_in, w1f.shape)
    x = x.reshape(rows, f_in).astype(compute_dtype)

    # Row tiling: multiple of the sublane pack (16 for bf16, 8 for f32); aim
    # for ~8 grid steps so both v7x TensorCores get work and the x/out DMA
    # pipeline stays deep, capped by row_tile (sweepable; larger on v5e/v6e).
    sub = 16 if jnp.dtype(compute_dtype).itemsize == 2 else 8
    desired = max(sub, _round_up(pl.cdiv(rows, 8), sub))
    tile = min(_round_up(row_tile, sub), desired)
    rows_p = _round_up(rows, tile)
    if rows_p != rows:
        x = jnp.pad(x, ((0, rows_p - rows), (0, 0)))

    if single_buffer_weights is None:
        # Only bother single-buffering once the weights are big enough to
        # matter for the VMEM budget (always correct either way).
        wbytes = (w1f.size + w2f.size + w3f.size) * jnp.dtype(w1f.dtype).itemsize
        single_buffer_weights = wbytes > (2 << 20)

    q = fused_mlp(x, w1f, b1f, w2f, b2f, w3f, b3f,
                  row_tile=tile, out_dtype=compute_dtype,
                  single_buffer_weights=single_buffer_weights)
    q = q[:rows, :NM].astype(jnp.float32)
    return q.reshape(bs, T, n_agents, n_actions)


# ------------------------- pure-JAX reference (spec) --------------------------

def _build_inputs_per_agent(state, obs, actions_onehot, *, n_agents, n_actions,
                            obs_individual_obs=True, obs_last_action=True):
    """Mirror of COMACriticNS._build_inputs for t=None."""
    bs, T = state.shape[0], state.shape[1]
    parts = []
    st = jnp.broadcast_to(state[:, :, None, :],
                          (bs, T, n_agents, state.shape[-1]))
    parts.append(st)
    if obs_individual_obs:
        parts.append(obs)
    joint = actions_onehot.reshape(bs, T, 1, n_agents * n_actions)
    joint = jnp.broadcast_to(joint, (bs, T, n_agents, n_agents * n_actions))
    agent_mask = 1.0 - jnp.eye(n_agents, dtype=joint.dtype)
    agent_mask = jnp.repeat(agent_mask.reshape(-1, 1), n_actions, axis=1)
    agent_mask = agent_mask.reshape(n_agents, n_agents * n_actions)
    parts.append(joint * agent_mask[None, None, :, :])
    if obs_last_action:
        last = jnp.concatenate(
            [jnp.zeros_like(actions_onehot[:, 0:1]), actions_onehot[:, :-1]], axis=1)
        last = last.reshape(bs, T, 1, n_agents * n_actions)
        last = jnp.broadcast_to(last, (bs, T, n_agents, n_agents * n_actions))
        parts.append(last)
    return jnp.concatenate([p.reshape(bs, T, n_agents, -1) for p in parts], axis=-1)


def reference_forward(state, obs, actions_onehot, params, **kw):
    inputs = _build_inputs_per_agent(
        state, obs, actions_onehot,
        n_agents=kw['n_agents'], n_actions=kw['n_actions'],
        obs_individual_obs=kw.get('obs_individual_obs', True),
        obs_last_action=kw.get('obs_last_action', True))
    w1, b1, w2, b2, w3, b3 = params
    qs = []
    with jax.default_matmul_precision("highest"):
        for i in range(kw['n_agents']):
            xi = inputs[:, :, i]                                   # (bs, T, feat)
            h1 = jax.nn.relu(xi @ w1[i] + b1[i, 0])
            h2 = jax.nn.relu(h1 @ w2[i] + b2[i, 0])
            qs.append((h2 @ w3[i] + b3[i, 0])[:, :, None, :])
    return jnp.concatenate(qs, axis=2)


# ----------------------------------- main ------------------------------------

if __name__ == "__main__":
    bs, T = 2, 8
    n_agents = 3          # args.n
    n_actions = 5         # args.m
    state_dim = 12
    obs_dim = 8
    hidden_dim = 32       # args.hidden_dim
    obs_individual_obs = True
    obs_last_action = True

    input_shape = state_dim
    if obs_individual_obs:
        input_shape += obs_dim
    input_shape += n_actions * n_agents
    if obs_last_action:
        input_shape += n_actions * n_agents          # 12 + 8 + 15 + 15 = 50

    key = jax.random.PRNGKey(0)
    ks = jax.random.split(key, 10)

    state = jax.random.normal(ks[0], (bs, T, state_dim), jnp.float32)
    obs = jax.random.normal(ks[1], (bs, T, n_agents, obs_dim), jnp.float32)
    act_idx = jax.random.randint(ks[2], (bs, T, n_agents), 0, n_actions)
    actions_onehot = jax.nn.one_hot(act_idx, n_actions, dtype=jnp.float32)

    def init_w(k, shape, fan_in):
        lim = 1.0 / float(fan_in) ** 0.5
        return jax.random.uniform(k, shape, jnp.float32, -lim, lim)

    w1 = init_w(ks[3], (n_agents, input_shape, hidden_dim), input_shape)
    b1 = init_w(ks[4], (n_agents, 1, hidden_dim), input_shape)
    w2 = init_w(ks[5], (n_agents, hidden_dim, hidden_dim), hidden_dim)
    b2 = init_w(ks[6], (n_agents, 1, hidden_dim), hidden_dim)
    w3 = init_w(ks[7], (n_agents, hidden_dim, n_actions), hidden_dim)
    b3 = init_w(ks[8], (n_agents, 1, n_actions), hidden_dim)
    params = (w1, b1, w2, b2, w3, b3)

    common = dict(n_agents=n_agents, n_actions=n_actions,
                  obs_individual_obs=obs_individual_obs,
                  obs_last_action=obs_last_action)
    fuse_kw = dict(state_dim=state_dim, obs_dim=obs_dim, **common)

    q_ref = reference_forward(state, obs, actions_onehot, params, **common)

    # Fused params are built ONCE per parameter update (hoisted out of the
    # per-step forward), one set per compute dtype.
    fused32 = fuse_params(params, compute_dtype=jnp.float32, **fuse_kw)
    fused16 = fuse_params(params, compute_dtype=jnp.bfloat16, **fuse_kw)

    # f32 debug/reference path (tolerance covers TPU matmul-precision defaults).
    fwd32 = jax.jit(functools.partial(coma_critic_ns_forward,
                                      compute_dtype=jnp.float32, **common))
    q32 = jax.block_until_ready(fwd32(state, obs, actions_onehot, fused32))
    assert q32.shape == (bs, T, n_agents, n_actions), q32.shape
    assert bool(jnp.all(jnp.isfinite(q32)))
    assert jnp.allclose(q32, q_ref, atol=1e-2, rtol=1e-2)

    # bf16 default path (bf16 weights/x/out, f32 MXU accumulation + bias/ReLU).
    fwd16 = jax.jit(functools.partial(coma_critic_ns_forward,
                                      compute_dtype=jnp.bfloat16, **common))
    q16 = jax.block_until_ready(fwd16(state, obs, actions_onehot, fused16))
    assert q16.shape == (bs, T, n_agents, n_actions), q16.shape
    assert bool(jnp.all(jnp.isfinite(q16)))
    assert jnp.allclose(q16, q_ref, atol=1e-1, rtol=1e-1)

    print("KERNEL_OK")
</pallas_src>

<mosaic_0001>
module attributes {stable_mosaic.version = 11 : i64} {
  func.func @_fused_mlp_kernel(%arg0: i32, %arg1: memref<8x66xf32, #tpu.memory_space<vmem>>, %arg2: memref<66x128xf32, #tpu.memory_space<vmem>>, %arg3: memref<1x128xf32, #tpu.memory_space<vmem>>, %arg4: memref<128x128xf32, #tpu.memory_space<vmem>>, %arg5: memref<1x128xf32, #tpu.memory_space<vmem>>, %arg6: memref<128x128xf32, #tpu.memory_space<vmem>>, %arg7: memref<1x128xf32, #tpu.memory_space<vmem>>, %arg8: memref<8x128xf32, #tpu.memory_space<vmem>>) attributes {dimension_semantics = [#tpu.dimension_semantics<parallel>], iteration_bounds = array<i64: 2>, scalar_prefetch = 0 : i64, scratch_operands = 0 : i64, tpu.core_type = #tpu.core_type<tc>, window_params = [{transform_indices = @transform_0, window_bounds = array<i64: 8, 66>}, {pipeline_mode = #tpu.pipeline_mode<synchronous>, transform_indices = @transform_1, window_bounds = array<i64: 66, 128>}, {pipeline_mode = #tpu.pipeline_mode<synchronous>, transform_indices = @transform_2, window_bounds = array<i64: 1, 128>}, {pipeline_mode = #tpu.pipeline_mode<synchronous>, transform_indices = @transform_3, window_bounds = array<i64: 128, 128>}, {pipeline_mode = #tpu.pipeline_mode<synchronous>, transform_indices = @transform_4, window_bounds = array<i64: 1, 128>}, {pipeline_mode = #tpu.pipeline_mode<synchronous>, transform_indices = @transform_5, window_bounds = array<i64: 128, 128>}, {pipeline_mode = #tpu.pipeline_mode<synchronous>, transform_indices = @transform_6, window_bounds = array<i64: 1, 128>}, {transform_indices = @transform_7, window_bounds = array<i64: 8, 128>}]} {
    %c0 = arith.constant 0 : index
    %c0_0 = arith.constant 0 : index
    %0 = vector.load %arg1[%c0, %c0_0] : memref<8x66xf32, #tpu.memory_space<vmem>>, vector<8x66xf32>
    %c0_1 = arith.constant 0 : index
    %c0_2 = arith.constant 0 : index
    %1 = vector.load %arg2[%c0_1, %c0_2] : memref<66x128xf32, #tpu.memory_space<vmem>>, vector<66x128xf32>
    %cst = arith.constant dense<0.000000e+00> : vector<8x128xf32>
    %2 = tpu.matmul %0, %1, %cst {dimension_numbers = #tpu.dot_dimension_numbers<[1], [0], [0], [1], [0, 0, 1, 1], [], []>} : vector<8x66xf32>, vector<66x128xf32>, vector<8x128xf32> -> vector<8x128xf32>
    %c0_3 = arith.constant 0 : index
    %c0_4 = arith.constant 0 : index
    %3 = vector.load %arg3[%c0_3, %c0_4] : memref<1x128xf32, #tpu.memory_space<vmem>>, vector<1x128xf32>
    %4 = vector.broadcast %3 : vector<1x128xf32> to vector<8x128xf32>
    %5 = arith.addf %2, %4 : vector<8x128xf32>
    %cst_5 = arith.constant 0.000000e+00 : f32
    %6 = vector.broadcast %cst_5 : f32 to vector<8x128xf32>
    %7 = arith.maximumf %5, %6 : vector<8x128xf32>
    %c0_6 = arith.constant 0 : index
    %c0_7 = arith.constant 0 : index
    %8 = vector.load %arg4[%c0_6, %c0_7] : memref<128x128xf32, #tpu.memory_space<vmem>>, vector<128x128xf32>
    %cst_8 = arith.constant dense<0.000000e+00> : vector<8x128xf32>
    %9 = tpu.matmul %7, %8, %cst_8 {dimension_numbers = #tpu.dot_dimension_numbers<[1], [0], [0], [1], [0, 0, 1, 1], [], []>} : vector<8x128xf32>, vector<128x128xf32>, vector<8x128xf32> -> vector<8x128xf32>
    %c0_9 = arith.constant 0 : index
    %c0_10 = arith.constant 0 : index
    %10 = vector.load %arg5[%c0_9, %c0_10] : memref<1x128xf32, #tpu.memory_space<vmem>>, vector<1x128xf32>
    %11 = vector.broadcast %10 : vector<1x128xf32> to vector<8x128xf32>
    %12 = arith.addf %9, %11 : vector<8x128xf32>
    %cst_11 = arith.constant 0.000000e+00 : f32
    %13 = vector.broadcast %cst_11 : f32 to vector<8x128xf32>
    %14 = arith.maximumf %12, %13 : vector<8x128xf32>
    %c0_12 = arith.constant 0 : index
    %c0_13 = arith.constant 0 : index
    %15 = vector.load %arg6[%c0_12, %c0_13] : memref<128x128xf32, #tpu.memory_space<vmem>>, vector<128x128xf32>
    %cst_14 = arith.constant dense<0.000000e+00> : vector<8x128xf32>
    %16 = tpu.matmul %14, %15, %cst_14 {dimension_numbers = #tpu.dot_dimension_numbers<[1], [0], [0], [1], [0, 0, 1, 1], [], []>} : vector<8x128xf32>, vector<128x128xf32>, vector<8x128xf32> -> vector<8x128xf32>
    %c0_15 = arith.constant 0 : index
    %c0_16 = arith.constant 0 : index
    %17 = vector.load %arg7[%c0_15, %c0_16] : memref<1x128xf32, #tpu.memory_space<vmem>>, vector<1x128xf32>
    %18 = vector.broadcast %17 : vector<1x128xf32> to vector<8x128xf32>
    %19 = arith.addf %16, %18 : vector<8x128xf32>
    %c0_17 = arith.constant 0 : index
    %c0_18 = arith.constant 0 : index
    %20 = vector.load %arg8[%c0_17, %c0_18] : memref<8x128xf32, #tpu.memory_space<vmem>>, vector<8x128xf32>
    tpu.vector_store %arg8[%c0_17, %c0_18], %19 {strides = array<i32>} : memref<8x128xf32, #tpu.memory_space<vmem>>, vector<8x128xf32>,
    return
  }
  func.func @transform_0(%arg0: i32) -> (i32, i32) {
    %c0_i32 = arith.constant 0 : i32
    %c0_i32_0 = arith.constant 0 : i32
    return %arg0, %c0_i32 : i32, i32
  }
  func.func @transform_1(%arg0: i32) -> (i32, i32) {
    %c0_i32 = arith.constant 0 : i32
    %c0_i32_0 = arith.constant 0 : i32
    %c0_i32_1 = arith.constant 0 : i32
    return %c0_i32, %c0_i32_0 : i32, i32
  }
  func.func @transform_2(%arg0: i32) -> (i32, i32) {
    %c0_i32 = arith.constant 0 : i32
    %c0_i32_0 = arith.constant 0 : i32
    %c0_i32_1 = arith.constant 0 : i32
    return %c0_i32, %c0_i32_0 : i32, i32
  }
  func.func @transform_3(%arg0: i32) -> (i32, i32) {
    %c0_i32 = arith.constant 0 : i32
    %c0_i32_0 = arith.constant 0 : i32
    %c0_i32_1 = arith.constant 0 : i32
    return %c0_i32, %c0_i32_0 : i32, i32
  }
  func.func @transform_4(%arg0: i32) -> (i32, i32) {
    %c0_i32 = arith.constant 0 : i32
    %c0_i32_0 = arith.constant 0 : i32
    %c0_i32_1 = arith.constant 0 : i32
    return %c0_i32, %c0_i32_0 : i32, i32
  }
  func.func @transform_5(%arg0: i32) -> (i32, i32) {
    %c0_i32 = arith.constant 0 : i32
    %c0_i32_0 = arith.constant 0 : i32
    %c0_i32_1 = arith.constant 0 : i32
    return %c0_i32, %c0_i32_0 : i32, i32
  }
  func.func @transform_6(%arg0: i32) -> (i32, i32) {
    %c0_i32 = arith.constant 0 : i32
    %c0_i32_0 = arith.constant 0 : i32
    %c0_i32_1 = arith.constant 0 : i32
    return %c0_i32, %c0_i32_0 : i32, i32
  }
  func.func @transform_7(%arg0: i32) -> (i32, i32) {
    %c0_i32 = arith.constant 0 : i32
    %c0_i32_0 = arith.constant 0 : i32
    return %arg0, %c0_i32 : i32, i32
  }
}

</mosaic_0001>

<bundles_post_ra>
// kernel: coma_critic_ns_forward.1
= control target key start
LH: loop header
LB: loop body
LE: loop exit
PB: predicated region body
PF: predicated region fallthrough
CT: control target
= control target key end

     0   :  { %s882_s24 = smov 0   ;;  %s1065_s0 = inlined_call_operand.vmem [shape: f32[16,66], index: 0, kind: input, shape index: {}]   ;;  %s1066_s1 = inlined_call_operand.vmem [shape: f32[66,128], index: 1, kind: input, shape index: {}]   ;;  %s1067_s2 = inlined_call_operand.vmem [shape: f32[1,128], index: 2, kind: input, shape index: {}]   ;;  %s1068_s3 = inlined_call_operand.vmem [shape: f32[128,128], index: 3, kind: input, shape index: {}]   ;;  %s1069_s4 = inlined_call_operand.vmem [shape: f32[1,128], index: 4, kind: input, shape index: {}]   ;;  %s1070_s5 = inlined_call_operand.vmem [shape: f32[128,128], index: 5, kind: input, shape index: {}]   ;;  %s1071_s6 = inlined_call_operand.vmem [shape: f32[1,128], index: 6, kind: input, shape index: {}]   ;;  %s1072_s7 = inlined_call_operand.vmem [shape: f32[16,128], index: 7, kind: output, shape index: {}]  }
   0x1 LB: > { %s611_s25 = sadd.s32 4294967295, %s837_s24   ;;  %p615_p0 = scmp.ge.s32.totalorder %s837_s24, 1  ;;  %s837_s24 = sphi %s882_s24, %s17_s24  }
   0x2   : > { %p236_p1 = scmp.lt.s32.totalorder %s837_s24, 3 }
   0x4   : > { %p237_p2 = pnand %p615_p0, %p236_p1 }
   0x5   : > { %v275_v0 = vld [vmem:[%s1066_s1] sm:$0xff] (!%p237_p2)  ;;  %v276_v1 = vld [vmem:[%s1066_s1 + $0x8] sm:$0xff] (!%p237_p2)  ;;  %v277_v2 = vld [vmem:[%s1066_s1 + $0x10] sm:$0xff] (!%p237_p2)  ;;  %v839_v3 = vmov (!%p237_p2), 0.0|0.0   ;;  %vm840_vm0 = vmmov (!%p237_p2), 0   ;;  %v841_v6 = vmov (!%p237_p2), 0.0  }
   0x6   : > { %240 = sbr.rel (%p237_p2) target bundleno = 672 (0x2a0), region = 48  ;;  %760 = vmatprep.subr.bf16.mxu0 (!%p237_p2), %v839_v3  ;;  %v761_v4 = vpack.c.bf16 (!%p237_p2), %v276_v1, %v275_v0  ;;  %v278_v5 = vld [vmem:[%s1066_s1 + $0x18] sm:$0xff] (!%p237_p2)  ;;  %772 = vmatprep.subr.bf16.mxu1 (!%p237_p2), %v839_v3  ;;  %p266_p3 = scmp.lt.s32.totalorder (!%p237_p2), %s611_s25, 1  ;;  %v370_v8 = vld [vmem:[%s1068_s3] sm:$0xff] (!%p237_p2)  ;;  %v371_v9 = vld [vmem:[%s1068_s3 + $0x8] sm:$0xff] (!%p237_p2)  ;;  %vm295_vm1 = vcmask (!%p237_p2), 1041408  }
   0x7   : > { %687 = vmatprep.mubr.msk.f32.mxu0 (!%p237_p2), %vm840_vm0, %v841_v6  ;;  %722 = vmatprep.mubr.msk.f32.mxu1 (!%p237_p2), %vm840_vm0, %v841_v6  ;;  %v764_v7 = vpack.c.bf16 (!%p237_p2), %v278_v5, %v277_v2  ;;  %v372_v10 = vld [vmem:[%s1068_s3 + $0x10] sm:$0xff] (!%p237_p2)  ;;  %v279_v11 = vld [vmem:[%s1066_s1 + $0x20] sm:$0xff] (!%p237_p2)  ;;  %v280_v12 = vld [vmem:[%s1066_s1 + $0x28] sm:$0xff] (!%p237_p2)  ;;  %v773_v13 = vpack.c.bf16 (!%p237_p2), %v371_v9, %v370_v8  ;;  %vm291_vm2 = vcmask (!%p237_p2), 539648  }
   0x8   : > { %762 = vmatpush3.bf16.msra.mxu0 (!%p237_p2), %v761_v4  ;;  %v373_v14 = vld [vmem:[%s1068_s3 + $0x18] sm:$0xff] (!%p237_p2)  ;;  %v767_v16 = vpack.c.bf16 (!%p237_p2), %v280_v12, %v279_v11  ;;  %v374_v17 = vld [vmem:[%s1068_s3 + $0x20] sm:$0xff] (!%p237_p2)  ;;  %v375_v18 = vld [vmem:[%s1068_s3 + $0x28] sm:$0xff] (!%p237_p2) }
   0x9   : > { %763 = vmatprep.subr.bf16.mxu0 (!%p237_p2), %v839_v3  ;;  %774 = vmatpush3.bf16.msra.mxu1 (!%p237_p2), %v773_v13  ;;  %v776_v15 = vpack.c.bf16 (!%p237_p2), %v373_v14, %v372_v10  ;;  %v281_v19 = vld [vmem:[%s1066_s1 + $0x30] sm:$0xff] (!%p237_p2)  ;;  %v282_v20 = vld [vmem:[%s1066_s1 + $0x38] sm:$0xff] (!%p237_p2)  ;;  %v779_v21 = vpack.c.bf16 (!%p237_p2), %v375_v18, %v374_v17  ;;  %v378_v26 = vld [vmem:[%s1068_s3 + $0x40] sm:$0xff] (!%p237_p2) }
   0xa   : > { %775 = vmatprep.subr.bf16.mxu1 (!%p237_p2), %v839_v3  ;;  %v770_v22 = vpack.c.bf16 (!%p237_p2), %v282_v20, %v281_v19  ;;  %v376_v23 = vld [vmem:[%s1068_s3 + $0x30] sm:$0xff] (!%p237_p2)  ;;  %v377_v24 = vld [vmem:[%s1068_s3 + $0x38] sm:$0xff] (!%p237_p2)  ;;  %v379_v27 = vld [vmem:[%s1068_s3 + $0x48] sm:$0xff] (!%p237_p2) }
   0xb   : > { %v782_v25 = vpack.c.bf16 (!%p237_p2), %v377_v24, %v376_v23  ;;  %v283_v28 = vld [vmem:[%s1066_s1 + $0x40] sm:$0x3] (!%p237_p2)  ;;  %v785_v30 = vpack.c.bf16 (!%p237_p2), %v379_v27, %v378_v26  ;;  %v380_v31 = vld [vmem:[%s1068_s3 + $0x50] sm:$0xff] (!%p237_p2)  ;;  %v381_v32 = vld [vmem:[%s1068_s3 + $0x58] sm:$0xff] (!%p237_p2) }
   0xc   : > { %765 = vmatpush3.bf16.msra.mxu0 (!%p237_p2), %v764_v7  ;;  %v788_v33 = vpack.c.bf16 (!%p237_p2), %v381_v32, %v380_v31  ;;  %v382_v34 = vld [vmem:[%s1068_s3 + $0x60] sm:$0xff] (!%p237_p2)  ;;  %v383_v35 = vld [vmem:[%s1068_s3 + $0x68] sm:$0xff] (!%p237_p2)  ;;  %v384_v37 = vld [vmem:[%s1068_s3 + $0x70] sm:$0xff] (!%p237_p2) }
   0xd   : > { %s1074_s25 = smov (!%p266_p3, %s611_s25), 1  ;;  %766 = vmatprep.subr.bf16.mxu0 %v839_v3  ;;  %777 = vmatpush3.bf16.msra.mxu1 %v776_v15  ;;  %v791_v36 = vpack.c.bf16 %v383_v35, %v382_v34  ;;  %v385_v38 = vld [vmem:[%s1068_s3 + $0x78] sm:$0xff]  ;;  %v464_v40 = vld [vmem:[%s1070_s5] sm:$0xff]  ;;  %v465_v41 = vld [vmem:[%s1070_s5 + $0x8] sm:$0xff] }
   0xe   : > { %s616_s10 = sshll.u32 %s1074_s25, 3  ;;  %778 = vmatprep.subr.bf16.mxu1 %v839_v3  ;;  %v794_v39 = vpack.c.bf16 %v385_v38, %v384_v37  ;;  %v466_v42 = vld [vmem:[%s1070_s5 + $0x10] sm:$0xff]  ;;  %v797_v43 = vpack.c.bf16 %v465_v41, %v464_v40  ;;  %v467_v44 = vld [vmem:[%s1070_s5 + $0x18] sm:$0xff]  ;;  %v468_v46 = vld [vmem:[%s1070_s5 + $0x20] sm:$0xff] }
   0xf   : > { %s269_s17 = scalar_lea.vmem %s1065_s0, %s616_s10  ;;  %v800_v45 = vpack.c.bf16 %v467_v44, %v466_v42  ;;  %v469_v47 = vld [vmem:[%s1070_s5 + $0x28] sm:$0xff]  ;;  %v470_v49 = vld [vmem:[%s1070_s5 + $0x30] sm:$0xff]  ;;  %v471_v50 = vld [vmem:[%s1070_s5 + $0x38] sm:$0xff]  ;;  %s273_s16 = scalar_lea.vmem %s1072_s7, %s616_s10 }
  0x10   : > { %768 = vmatpush3.bf16.msra.mxu0 %v767_v16  ;;  %v274_v29 = vld [vmem:[%s269_s17] sm:$0xff]  ;;  %v803_v48 = vpack.c.bf16 %v469_v47, %v468_v46  ;;  %v806_v51 = vpack.c.bf16 %v471_v50, %v470_v49  ;;  %v473_v53 = vld [vmem:[%s1070_s5 + $0x48] sm:$0xff]  ;;  %v474_v55 = vld [vmem:[%s1070_s5 + $0x50] sm:$0xff] }
  0x11   : > { %769 = vmatprep.subr.bf16.mxu0 %v839_v3  ;;  %780 = vmatpush3.bf16.msra.mxu1 %v779_v21  ;;  %v472_v52 = vld [vmem:[%s1070_s5 + $0x40] sm:$0xff]  ;;  %v475_v56 = vld [vmem:[%s1070_s5 + $0x58] sm:$0xff]  ;;  %v477_v59 = vld [vmem:[%s1070_s5 + $0x68] sm:$0xff] }
  0x12   : > { %781 = vmatprep.subr.bf16.mxu1 %v839_v3  ;;  %v809_v54 = vpack.c.bf16 %v473_v53, %v472_v52  ;;  %v812_v57 = vpack.c.bf16 %v475_v56, %v474_v55  ;;  %v476_v58 = vld [vmem:[%s1070_s5 + $0x60] sm:$0xff]  ;;  %v478_v2 = vld [vmem:[%s1070_s5 + $0x70] sm:$0xff]  ;;  %v479_v4 = vld [vmem:[%s1070_s5 + $0x78] sm:$0xff] }
  0x13   : > { %v815_v60 = vpack.c.bf16 %v477_v59, %v476_v58  ;;  %v618_v61 = vld [vmem:[%s1067_s2] ss:$0 sm:$0xff]  ;;  %v818_v5 = vpack.c.bf16 %v479_v4, %v478_v2 }
  0x14   : > { %771 = vmatpush3.bf16.msra.mxu0 %v770_v22  ;;  %v622_v10 = vld [vmem:[%s1071_s6] ss:$0 sm:$0xff] }
  0x15   : > { %685 = vmatprep.subr.mxu0 %v841_v6  ;;  %783 = vmatpush3.bf16.msra.mxu1 %v782_v25 }
  0x16   : > { %784 = vmatprep.subr.bf16.mxu1 %v839_v3 }
  0x18   : > { %686 = vmatpush3.msk.msra.mxu0 %vm295_vm1, %v283_v28 }
  0x19   : > { %688 = vmatmul.mubr.msk.f32.vlgmr.msra.gmra.mrb[0].mxu0 %vm291_vm2, %v274_v29  ;;  %796 = vmatprep.subr.bf16.mxu0 %v839_v3 }
  0x1a   : > { %757 = vmatprep.mubr.msk.f32.mxu0 %vm840_vm0, %v841_v6  ;;  %786 = vmatpush3.bf16.msra.mxu1 %v785_v30 }
  0x1b   : > { %787 = vmatprep.subr.bf16.mxu1 %v839_v3  ;;  %798 = vmatpush3.bf16.msra.mxu0 %v797_v43 }
  0x1c   : > { %799 = vmatprep.subr.bf16.mxu0 %v839_v3 }
  0x1e   : > { %789 = vmatpush3.bf16.msra.mxu1 %v788_v33 }
  0x1f   : > { %790 = vmatprep.subr.bf16.mxu1 %v839_v3  ;;  %801 = vmatpush3.bf16.msra.mxu0 %v800_v45 }
  0x20   : > { %802 = vmatprep.subr.bf16.mxu0 %v839_v3 }
  0x22   : > { %792 = vmatpush3.bf16.msra.mxu1 %v791_v36 }
  0x23   : > { %793 = vmatprep.subr.bf16.mxu1 %v839_v3  ;;  %804 = vmatpush3.bf16.msra.mxu0 %v803_v48 }
  0x24   : > { %805 = vmatprep.subr.bf16.mxu0 %v839_v3 }
  0x26   : > { %795 = vmatpush3.bf16.msra.mxu1 %v794_v39 }
  0x27   : > { %807 = vmatpush3.bf16.msra.mxu0 %v806_v51 }
  0x28   : > { %808 = vmatprep.subr.bf16.mxu0 %v839_v3 }
  0x2b   : > { %810 = vmatpush3.bf16.msra.mxu0 %v809_v54 }
  0x2c   : > { %811 = vmatprep.subr.bf16.mxu0 %v839_v3 }
  0x2f   : > { %813 = vmatpush3.bf16.msra.mxu0 %v812_v57 }
  0x30   : > { %814 = vmatprep.subr.bf16.mxu0 %v839_v3 }
  0x33   : > { %816 = vmatpush3.bf16.msra.mxu0 %v815_v60 }
  0x34   : > { %817 = vmatprep.subr.bf16.mxu0 %v839_v3  ;;  %v621_v3 = vld [vmem:[%s1069_s4] ss:$0 sm:$0xff] }
  0x37   : > { %819 = vmatpush3.bf16.msra.mxu0 %v818_v5 }
  0xec   : > { %v365_v62 = vpop.f32.mrb[0].mxu0 }
  0xed   : > { %v366_v63 = vadd.f32 %v618_v61, %v365_v62  ;;  %v689_v0 = vpop.f32.mrb[1].mxu0 }
  0xef   : > { %v369_v1 = vmax.f32 %v366_v63, 0.0 }
  0xf1   : > { %723 = vmatmul.mubr.f32.vlgmr.msra.gmra.mrb[0].mxu1 %v369_v1 }
 0x1c4   : > { %v459_v6 = vpop.f32.mrb[0].mxu1 }
 0x1c5   : > { %v460_v7 = vadd.f32 %v621_v3, %v459_v6  ;;  %v724_v8 = vpop.f32.mrb[1].mxu1 }
 0x1c7   : > { %v463_v9 = vmax.f32 %v460_v7, 0.0 }
 0x1c9   : > { %758 = vmatmul.mubr.f32.vlgmr.msra.gmra.mrb[2].mxu0 %v463_v9 }
 0x29c   : > { %v553_v11 = vpop.f32.mrb[2].mxu0 }
 0x29d   : > { %v554_v12 = vadd.f32 %v622_v10, %v553_v11  ;;  %v759_v13 = vpop.f32.mrb[3].mxu0 }
 0x29f   : > { %557 = vst [vmem:[%s273_s16] sm:$0xff] %v554_v12 }
 0x2a0 PF: > { %s17_s24 = sadd.s32 1, %s837_s24  }
 0x2a1   : > { %p14_p4 = scmp.ge.s32.totalorder %s17_s24, 4  }
 0x2a3   :  { %16 = sbr.rel (!%p14_p4) target bundleno = 1 (0x1), region = 78 }

</bundles_post_ra>
